<compile_context>
chip_gen: v7x
topology: tpu7x:2x2x1
jax: 0.10.0
libtpu: 0.0.40
codegen_flags: <defaults>
</compile_context>

<pallas_src>
import math

import jax
import jax.numpy as jnp
from jax import lax
from jax.experimental import pallas as pl
from jax.experimental.pallas import tpu as pltpu


# -----------------------------------------------------------------------------
# Fused bidirectional-GRU recurrence + masked pooling (single kernel invocation)
# -----------------------------------------------------------------------------
def bigru_kernel(gi_ref, whh_ref, bn_ref, mask_ref, out_ref):
    """gi_ref  : (B, T, 6D)  x @ [W_ih_f | W_ih_r] + b_ih (+ r/z parts of b_hh folded)
       whh_ref : (2, D, 3D)  recurrent weights (0 = forward, 1 = backward)
       bn_ref  : (2, 1, D)   b_hh for the n gate (must stay inside the r*(...) term)
       mask_ref: (B, T, 1)   attention mask, one column per recurrence step
       out_ref : (B, 2D)     masked-pooled hidden states, fwd in [0:D], bwd in [D:2D]
    """
    B, T, sixD = gi_ref.shape
    D = sixD // 6
    threeD = 3 * D

    # Hoist the (1, D) -> (T, D) bias broadcasts out of the serial loop (no in-loop CSE).
    b_n_f = jnp.broadcast_to(bn_ref[0], (T, D))
    b_n_b = jnp.broadcast_to(bn_ref[1], (T, D))

    def sigmoid(x):
        # One EUP tanh push instead of exp + reciprocal.
        return 0.5 * (jnp.tanh(0.5 * x) + 1.0)

    def gru_gates(gi, gh, h, b_n):
        # PyTorch GRUCell gate order: (r, z, n)
        r = sigmoid(gi[:, 0 * D:1 * D] + gh[:, 0 * D:1 * D])
        z = sigmoid(gi[:, 1 * D:2 * D] + gh[:, 1 * D:2 * D])
        n = jnp.tanh(gi[:, 2 * D:3 * D] + r * (gh[:, 2 * D:3 * D] + b_n))
        return (1.0 - z) * n + z * h

    def step(s, carry):
        h_f, h_b = carry
        idx_f = s                 # forward walks 0 .. B-1
        idx_b = B - 1 - s         # backward walks B-1 .. 0

        gi_f = gi_ref[idx_f][:, :threeD]          # (T, 3D), 128-aligned vreg slice
        gi_b = gi_ref[idx_b][:, threeD:]          # (T, 3D)

        # TODO(synk): hold each W_hh resident in MXU weight registers across the loop
        # (pltpu.matmul_push_rhs once + matmul_acc_lhs/matmul_pop per step) instead of
        # re-staging the (D, 3D) RHS on every serial step.
        gh_f = jnp.dot(h_f, whh_ref[0], preferred_element_type=jnp.float32)  # (T, 3D)
        gh_b = jnp.dot(h_b, whh_ref[1], preferred_element_type=jnp.float32)  # (T, 3D)

        h_f_new = gru_gates(gi_f, gh_f, h_f, b_n_f)
        h_b_new = gru_gates(gi_b, gh_b, h_b, b_n_b)

        # Masked pooling on VPU (multiply) + XLU (sublane reduce); MXU pipe stays clean.
        # TODO(synk): batch up to 8 pooled rows per direction and store once per 8 steps
        # instead of per-step single-sublane stores when B is large.
        m_f = mask_ref[idx_f]                     # (T, 1)
        m_b = mask_ref[idx_b]
        out_ref[pl.ds(idx_f, 1), :D] = jnp.sum(m_f * h_f_new, axis=0, keepdims=True)
        out_ref[pl.ds(idx_b, 1), D:] = jnp.sum(m_b * h_b_new, axis=0, keepdims=True)
        return (h_f_new, h_b_new)

    h0 = jnp.zeros((T, D), jnp.float32)   # one vreg per direction at T=8, D=128 f32
    lax.fori_loop(0, B, step, (h0, h0), unroll=2)


# -----------------------------------------------------------------------------
# Wrapper: hoisted input projection + pallas_call + pooling epilogue
# -----------------------------------------------------------------------------
def gru_forward(emb, mask, params):
    """emb: (B, T, D) f32, mask: (B, T) f32 -> (B, 2D) f32."""
    B, T, D = emb.shape
    wih_f, whh_f, bih_f, bhh_f, wih_r, whh_r, bih_r, bhh_r = params

    # Hoisted input projection: ONE (B*T, D) x (D, 6D) MXU matmul for both directions.
    w_cat = jnp.concatenate([wih_f, wih_r], axis=1)                        # (D, 6D)
    # Fold b_ih plus the r/z parts of b_hh into the projection bias; b_hn stays in-kernel.
    b_cat = jnp.concatenate(
        [bih_f[:, :2 * D] + bhh_f[:, :2 * D], bih_f[:, 2 * D:],
         bih_r[:, :2 * D] + bhh_r[:, :2 * D], bih_r[:, 2 * D:]], axis=1)   # (1, 6D)
    gi = (jnp.dot(emb.reshape(B * T, D), w_cat, preferred_element_type=jnp.float32)
          + b_cat).reshape(B, T, 6 * D)        # contiguous reshape, no stack copy
    # TODO(synk): store gi in bfloat16 (keep f32 accumulation) to halve VMEM/DMA bytes
    # for large B*T, especially under v7x's 64 MiB VMEM.

    whh = jnp.stack([whh_f, whh_r])                                        # (2, D, 3D)
    b_n = jnp.stack([bhh_f[:, 2 * D:], bhh_r[:, 2 * D:]])                  # (2, 1, D)
    mask_e = mask[:, :, None]                                              # (B, T, 1)

    flops = 4 * B * T * D * 3 * D                   # 2 dirs x B steps x 2*T*D*3D MACs
    transcendentals = 6 * B * T * D                 # 2 dirs x 3 gates x T*D
    bytes_accessed = 4 * (B * T * 6 * D + 2 * D * 3 * D + 2 * D + B * T + B * 2 * D)

    # TODO(synk): for large B*T, stream chunks of B over an "arbitrary" grid axis with
    # the hidden states carried in VMEM scratch (and split the independent T rows across
    # the two TensorCores on v7x via core_map) instead of holding the whole (B, T, 6D)
    # slab resident in VMEM.
    pooled = pl.pallas_call(
        bigru_kernel,
        out_shape=jax.ShapeDtypeStruct((B, 2 * D), jnp.float32),
        in_specs=[
            pl.BlockSpec(memory_space=pltpu.MemorySpace.VMEM),   # gi
            pl.BlockSpec(memory_space=pltpu.MemorySpace.VMEM),   # whh
            pl.BlockSpec(memory_space=pltpu.MemorySpace.VMEM),   # b_n (n-gate bias)
            pl.BlockSpec(memory_space=pltpu.MemorySpace.VMEM),   # mask
        ],
        out_specs=pl.BlockSpec(memory_space=pltpu.MemorySpace.VMEM),
        compiler_params=pltpu.CompilerParams(vmem_limit_bytes=64 * 1024 * 1024),
        cost_estimate=pl.CostEstimate(flops=flops,
                                      transcendentals=transcendentals,
                                      bytes_accessed=bytes_accessed),
    )(gi, whh, b_n, mask_e)

    # universal_sentence_embedding epilogue on the lane-dense (B, 2D) output (JAX glue).
    toksum = jnp.sum(mask, axis=1, keepdims=True)                          # (B, 1)
    divisor = jnp.where(toksum > 0, jnp.sqrt(toksum), 1.0)                 # all-pad guard
    return pooled / divisor


# -----------------------------------------------------------------------------
# Pure-JAX reference (mirrors the PyTorch forward semantics exactly)
# -----------------------------------------------------------------------------
def gru_forward_ref(emb, mask, params):
    B, T, D = emb.shape
    wih_f, whh_f, bih_f, bhh_f, wih_r, whh_r, bih_r, bhh_r = params

    def cell(x, h, wih, whh, bih, bhh):
        gi = x @ wih + bih
        gh = h @ whh + bhh
        r = jax.nn.sigmoid(gi[:, :D] + gh[:, :D])
        z = jax.nn.sigmoid(gi[:, D:2 * D] + gh[:, D:2 * D])
        n = jnp.tanh(gi[:, 2 * D:] + r * gh[:, 2 * D:])
        return (1.0 - z) * n + z * h

    hf = jnp.zeros((T, D), jnp.float32)
    hr = jnp.zeros((T, D), jnp.float32)
    out_f = [None] * B
    out_r = [None] * B
    for s in range(B):
        hf = cell(emb[s], hf, wih_f, whh_f, bih_f, bhh_f)
        out_f[s] = hf
    for s in range(B - 1, -1, -1):
        hr = cell(emb[s], hr, wih_r, whh_r, bih_r, bhh_r)
        out_r[s] = hr
    H = jnp.stack([jnp.concatenate([out_f[s], out_r[s]], axis=-1) for s in range(B)])
    pooled = jnp.einsum("btd,bt->bd", H, mask)
    toksum = jnp.sum(mask, axis=1, keepdims=True)
    divisor = jnp.where(toksum > 0, jnp.sqrt(toksum), 1.0)   # same guard as main path
    return pooled / divisor


# -----------------------------------------------------------------------------
# Deterministic parameter init (xavier_uniform_ for matrices, as in init_params)
# -----------------------------------------------------------------------------
def xavier_uniform(key, shape):
    fan_out, fan_in = shape  # torch layout: (out_features, in_features)
    a = math.sqrt(6.0 / (fan_in + fan_out))
    return jax.random.uniform(key, shape, jnp.float32, minval=-a, maxval=a)


if __name__ == "__main__":
    B, T, D, V = 2, 8, 128, 64   # batch, seq-len, d_model, vocab_size

    key = jax.random.PRNGKey(0)
    k_ids, k_emb, k_fwd, k_bwd = jax.random.split(key, 4)

    input_ids = jax.random.randint(k_ids, (B, T), 0, V, dtype=jnp.int32)
    input_ids = input_ids.at[:, 0].set(jnp.maximum(input_ids[:, 0], 1))  # avoid all-pad rows

    # Embedding table (init_params applies xavier_uniform_ to the whole weight).
    emb_table = xavier_uniform(k_emb, (V, D))

    std = 1.0 / math.sqrt(D)

    def gru_dir_params(k):
        kw1, kw2, kb1, kb2 = jax.random.split(k, 4)
        wih = xavier_uniform(kw1, (3 * D, D)).T          # stored transposed: (D, 3D)
        whh = xavier_uniform(kw2, (3 * D, D)).T
        bih = jax.random.uniform(kb1, (1, 3 * D), jnp.float32, -std, std)
        bhh = jax.random.uniform(kb2, (1, 3 * D), jnp.float32, -std, std)
        return wih, whh, bih, bhh

    params = (*gru_dir_params(k_fwd), *gru_dir_params(k_bwd))

    # Glue: embedding lookup; embedding_dropout is identity at eval time.
    mask = (input_ids != 0).astype(jnp.float32)          # attention_mask = input_ids.ne(0)
    E = emb_table[input_ids]                             # (B, T, D)

    out = gru_forward(E, mask, params)
    out = jax.block_until_ready(out)

    ref = gru_forward_ref(E, mask, params)
    assert out.shape == (B, 2 * D), out.shape
    assert jnp.allclose(out, ref, atol=2e-3, rtol=2e-3), float(jnp.max(jnp.abs(out - ref)))

    print("KERNEL_OK")
</pallas_src>

<mosaic_0001>
module attributes {stable_mosaic.version = 11 : i64} {
  func.func @bigru_kernel(%arg0: memref<2x8x768xf32, #tpu.memory_space<vmem>>, %arg1: memref<2x128x384xf32, #tpu.memory_space<vmem>>, %arg2: memref<2x1x128xf32, #tpu.memory_space<vmem>>, %arg3: memref<2x8x1xf32, #tpu.memory_space<vmem>>, %arg4: memref<2x256xf32, #tpu.memory_space<vmem>>) attributes {dimension_semantics = [], scalar_prefetch = 0 : i64, scratch_operands = 0 : i64, tpu.core_type = #tpu.core_type<tc>} {
    %c0 = arith.constant 0 : index
    %c0_0 = arith.constant 0 : index
    %c0_1 = arith.constant 0 : index
    %0 = vector.load %arg2[%c0, %c0_0, %c0_1] : memref<2x1x128xf32, #tpu.memory_space<vmem>>, vector<1x1x128xf32>
    %1 = vector.shape_cast %0 : vector<1x1x128xf32> to vector<1x128xf32>
    %2 = vector.shape_cast %1 : vector<1x128xf32> to vector<1x128xf32>
    %3 = vector.broadcast %2 : vector<1x128xf32> to vector<8x128xf32>
    %c1 = arith.constant 1 : index
    %c0_2 = arith.constant 0 : index
    %c0_3 = arith.constant 0 : index
    %4 = vector.load %arg2[%c1, %c0_2, %c0_3] : memref<2x1x128xf32, #tpu.memory_space<vmem>>, vector<1x1x128xf32>
    %5 = vector.shape_cast %4 : vector<1x1x128xf32> to vector<1x128xf32>
    %6 = vector.shape_cast %5 : vector<1x128xf32> to vector<1x128xf32>
    %7 = vector.broadcast %6 : vector<1x128xf32> to vector<8x128xf32>
    %cst = arith.constant 0.000000e+00 : f32
    %8 = vector.broadcast %cst : f32 to vector<8x128xf32>
    %c0_i32 = arith.constant 0 : i32
    %c1_i32 = arith.constant 1 : i32
    %9 = arith.subi %c1_i32, %c0_i32 : i32
    %10 = arith.index_cast %c0_i32 : i32 to index
    %c0_4 = arith.constant 0 : index
    %c0_5 = arith.constant 0 : index
    %11 = vector.load %arg0[%10, %c0_4, %c0_5] : memref<2x8x768xf32, #tpu.memory_space<vmem>>, vector<1x8x768xf32>
    %12 = vector.shape_cast %11 : vector<1x8x768xf32> to vector<8x768xf32>
    %13 = vector.extract_strided_slice %12 {offsets = [0, 0], sizes = [8, 384], strides = [1, 1]} : vector<8x768xf32> to vector<8x384xf32>
    %14 = arith.index_cast %9 : i32 to index
    %c0_6 = arith.constant 0 : index
    %c0_7 = arith.constant 0 : index
    %15 = vector.load %arg0[%14, %c0_6, %c0_7] : memref<2x8x768xf32, #tpu.memory_space<vmem>>, vector<1x8x768xf32>
    %16 = vector.shape_cast %15 : vector<1x8x768xf32> to vector<8x768xf32>
    %17 = vector.extract_strided_slice %16 {offsets = [0, 384], sizes = [8, 384], strides = [1, 1]} : vector<8x768xf32> to vector<8x384xf32>
    %c0_8 = arith.constant 0 : index
    %c0_9 = arith.constant 0 : index
    %c0_10 = arith.constant 0 : index
    %18 = vector.load %arg1[%c0_8, %c0_9, %c0_10] : memref<2x128x384xf32, #tpu.memory_space<vmem>>, vector<1x128x384xf32>
    %19 = vector.shape_cast %18 : vector<1x128x384xf32> to vector<128x384xf32>
    %cst_11 = arith.constant dense<0.000000e+00> : vector<8x384xf32>
    %20 = tpu.matmul %8, %19, %cst_11 {dimension_numbers = #tpu.dot_dimension_numbers<[1], [0], [0], [1], [0, 0, 1, 1], [], []>} : vector<8x128xf32>, vector<128x384xf32>, vector<8x384xf32> -> vector<8x384xf32>
    %c1_12 = arith.constant 1 : index
    %c0_13 = arith.constant 0 : index
    %c0_14 = arith.constant 0 : index
    %21 = vector.load %arg1[%c1_12, %c0_13, %c0_14] : memref<2x128x384xf32, #tpu.memory_space<vmem>>, vector<1x128x384xf32>
    %22 = vector.shape_cast %21 : vector<1x128x384xf32> to vector<128x384xf32>
    %cst_15 = arith.constant dense<0.000000e+00> : vector<8x384xf32>
    %23 = tpu.matmul %8, %22, %cst_15 {dimension_numbers = #tpu.dot_dimension_numbers<[1], [0], [0], [1], [0, 0, 1, 1], [], []>} : vector<8x128xf32>, vector<128x384xf32>, vector<8x384xf32> -> vector<8x384xf32>
    %24 = vector.extract_strided_slice %13 {offsets = [0, 0], sizes = [8, 128], strides = [1, 1]} : vector<8x384xf32> to vector<8x128xf32>
    %25 = vector.extract_strided_slice %20 {offsets = [0, 0], sizes = [8, 128], strides = [1, 1]} : vector<8x384xf32> to vector<8x128xf32>
    %26 = arith.addf %24, %25 : vector<8x128xf32>
    %cst_16 = arith.constant 5.000000e-01 : f32
    %27 = vector.broadcast %cst_16 : f32 to vector<8x128xf32>
    %28 = arith.mulf %27, %26 : vector<8x128xf32>
    %29 = math.tanh %28 : vector<8x128xf32>
    %cst_17 = arith.constant 1.000000e+00 : f32
    %30 = vector.broadcast %cst_17 : f32 to vector<8x128xf32>
    %31 = arith.addf %29, %30 : vector<8x128xf32>
    %cst_18 = arith.constant 5.000000e-01 : f32
    %32 = vector.broadcast %cst_18 : f32 to vector<8x128xf32>
    %33 = arith.mulf %32, %31 : vector<8x128xf32>
    %34 = vector.extract_strided_slice %13 {offsets = [0, 128], sizes = [8, 128], strides = [1, 1]} : vector<8x384xf32> to vector<8x128xf32>
    %35 = vector.extract_strided_slice %20 {offsets = [0, 128], sizes = [8, 128], strides = [1, 1]} : vector<8x384xf32> to vector<8x128xf32>
    %36 = arith.addf %34, %35 : vector<8x128xf32>
    %cst_19 = arith.constant 5.000000e-01 : f32
    %37 = vector.broadcast %cst_19 : f32 to vector<8x128xf32>
    %38 = arith.mulf %37, %36 : vector<8x128xf32>
    %39 = math.tanh %38 : vector<8x128xf32>
    %cst_20 = arith.constant 1.000000e+00 : f32
    %40 = vector.broadcast %cst_20 : f32 to vector<8x128xf32>
    %41 = arith.addf %39, %40 : vector<8x128xf32>
    %cst_21 = arith.constant 5.000000e-01 : f32
    %42 = vector.broadcast %cst_21 : f32 to vector<8x128xf32>
    %43 = arith.mulf %42, %41 : vector<8x128xf32>
    %44 = vector.extract_strided_slice %13 {offsets = [0, 256], sizes = [8, 128], strides = [1, 1]} : vector<8x384xf32> to vector<8x128xf32>
    %45 = vector.extract_strided_slice %20 {offsets = [0, 256], sizes = [8, 128], strides = [1, 1]} : vector<8x384xf32> to vector<8x128xf32>
    %46 = arith.addf %45, %3 : vector<8x128xf32>
    %47 = arith.mulf %33, %46 : vector<8x128xf32>
    %48 = arith.addf %44, %47 : vector<8x128xf32>
    %49 = math.tanh %48 : vector<8x128xf32>
    %cst_22 = arith.constant 1.000000e+00 : f32
    %50 = vector.broadcast %cst_22 : f32 to vector<8x128xf32>
    %51 = arith.subf %50, %43 : vector<8x128xf32>
    %52 = arith.mulf %51, %49 : vector<8x128xf32>
    %53 = arith.mulf %43, %8 : vector<8x128xf32>
    %54 = arith.addf %52, %53 : vector<8x128xf32>
    %55 = vector.extract_strided_slice %17 {offsets = [0, 0], sizes = [8, 128], strides = [1, 1]} : vector<8x384xf32> to vector<8x128xf32>
    %56 = vector.extract_strided_slice %23 {offsets = [0, 0], sizes = [8, 128], strides = [1, 1]} : vector<8x384xf32> to vector<8x128xf32>
    %57 = arith.addf %55, %56 : vector<8x128xf32>
    %cst_23 = arith.constant 5.000000e-01 : f32
    %58 = vector.broadcast %cst_23 : f32 to vector<8x128xf32>
    %59 = arith.mulf %58, %57 : vector<8x128xf32>
    %60 = math.tanh %59 : vector<8x128xf32>
    %cst_24 = arith.constant 1.000000e+00 : f32
    %61 = vector.broadcast %cst_24 : f32 to vector<8x128xf32>
    %62 = arith.addf %60, %61 : vector<8x128xf32>
    %cst_25 = arith.constant 5.000000e-01 : f32
    %63 = vector.broadcast %cst_25 : f32 to vector<8x128xf32>
    %64 = arith.mulf %63, %62 : vector<8x128xf32>
    %65 = vector.extract_strided_slice %17 {offsets = [0, 128], sizes = [8, 128], strides = [1, 1]} : vector<8x384xf32> to vector<8x128xf32>
    %66 = vector.extract_strided_slice %23 {offsets = [0, 128], sizes = [8, 128], strides = [1, 1]} : vector<8x384xf32> to vector<8x128xf32>
    %67 = arith.addf %65, %66 : vector<8x128xf32>
    %cst_26 = arith.constant 5.000000e-01 : f32
    %68 = vector.broadcast %cst_26 : f32 to vector<8x128xf32>
    %69 = arith.mulf %68, %67 : vector<8x128xf32>
    %70 = math.tanh %69 : vector<8x128xf32>
    %cst_27 = arith.constant 1.000000e+00 : f32
    %71 = vector.broadcast %cst_27 : f32 to vector<8x128xf32>
    %72 = arith.addf %70, %71 : vector<8x128xf32>
    %cst_28 = arith.constant 5.000000e-01 : f32
    %73 = vector.broadcast %cst_28 : f32 to vector<8x128xf32>
    %74 = arith.mulf %73, %72 : vector<8x128xf32>
    %75 = vector.extract_strided_slice %17 {offsets = [0, 256], sizes = [8, 128], strides = [1, 1]} : vector<8x384xf32> to vector<8x128xf32>
    %76 = vector.extract_strided_slice %23 {offsets = [0, 256], sizes = [8, 128], strides = [1, 1]} : vector<8x384xf32> to vector<8x128xf32>
    %77 = arith.addf %76, %7 : vector<8x128xf32>
    %78 = arith.mulf %64, %77 : vector<8x128xf32>
    %79 = arith.addf %75, %78 : vector<8x128xf32>
    %80 = math.tanh %79 : vector<8x128xf32>
    %cst_29 = arith.constant 1.000000e+00 : f32
    %81 = vector.broadcast %cst_29 : f32 to vector<8x128xf32>
    %82 = arith.subf %81, %74 : vector<8x128xf32>
    %83 = arith.mulf %82, %80 : vector<8x128xf32>
    %84 = arith.mulf %74, %8 : vector<8x128xf32>
    %85 = arith.addf %83, %84 : vector<8x128xf32>
    %86 = arith.index_cast %c0_i32 : i32 to index
    %c0_30 = arith.constant 0 : index
    %c0_31 = arith.constant 0 : index
    %87 = vector.load %arg3[%86, %c0_30, %c0_31] : memref<2x8x1xf32, #tpu.memory_space<vmem>>, vector<1x8x1xf32>
    %88 = vector.shape_cast %87 : vector<1x8x1xf32> to vector<8x1xf32>
    %89 = arith.index_cast %9 : i32 to index
    %c0_32 = arith.constant 0 : index
    %c0_33 = arith.constant 0 : index
    %90 = vector.load %arg3[%89, %c0_32, %c0_33] : memref<2x8x1xf32, #tpu.memory_space<vmem>>, vector<1x8x1xf32>
    %91 = vector.shape_cast %90 : vector<1x8x1xf32> to vector<8x1xf32>
    %92 = vector.broadcast %88 : vector<8x1xf32> to vector<8x128xf32>
    %93 = arith.mulf %92, %54 : vector<8x128xf32>
    %cst_34 = arith.constant dense<0.000000e+00> : vector<128xf32>
    %94 = vector.multi_reduction <add>, %93, %cst_34 [0] : vector<8x128xf32> to vector<128xf32>
    %95 = vector.shape_cast %94 : vector<128xf32> to vector<1x128xf32>
    %96 = arith.index_cast %c0_i32 : i32 to index
    %c0_35 = arith.constant 0 : index
    %97 = vector.load %arg4[%96, %c0_35] : memref<2x256xf32, #tpu.memory_space<vmem>>, vector<1x128xf32>
    tpu.vector_store %arg4[%96, %c0_35], %95 {strides = array<i32>} : memref<2x256xf32, #tpu.memory_space<vmem>>, vector<1x128xf32>,
    %98 = vector.broadcast %91 : vector<8x1xf32> to vector<8x128xf32>
    %99 = arith.mulf %98, %85 : vector<8x128xf32>
    %cst_36 = arith.constant dense<0.000000e+00> : vector<128xf32>
    %100 = vector.multi_reduction <add>, %99, %cst_36 [0] : vector<8x128xf32> to vector<128xf32>
    %101 = vector.shape_cast %100 : vector<128xf32> to vector<1x128xf32>
    %102 = arith.index_cast %9 : i32 to index
    %c128 = arith.constant 128 : index
    %103 = vector.load %arg4[%102, %c128] : memref<2x256xf32, #tpu.memory_space<vmem>>, vector<1x128xf32>
    tpu.vector_store %arg4[%102, %c128], %101 {strides = array<i32>} : memref<2x256xf32, #tpu.memory_space<vmem>>, vector<1x128xf32>,
    %c1_i32_37 = arith.constant 1 : i32
    %c1_i32_38 = arith.constant 1 : i32
    %104 = arith.subi %c1_i32_38, %c1_i32_37 : i32
    %105 = arith.index_cast %c1_i32_37 : i32 to index
    %c0_39 = arith.constant 0 : index
    %c0_40 = arith.constant 0 : index
    %106 = vector.load %arg0[%105, %c0_39, %c0_40] : memref<2x8x768xf32, #tpu.memory_space<vmem>>, vector<1x8x768xf32>
    %107 = vector.shape_cast %106 : vector<1x8x768xf32> to vector<8x768xf32>
    %108 = vector.extract_strided_slice %107 {offsets = [0, 0], sizes = [8, 384], strides = [1, 1]} : vector<8x768xf32> to vector<8x384xf32>
    %109 = arith.index_cast %104 : i32 to index
    %c0_41 = arith.constant 0 : index
    %c0_42 = arith.constant 0 : index
    %110 = vector.load %arg0[%109, %c0_41, %c0_42] : memref<2x8x768xf32, #tpu.memory_space<vmem>>, vector<1x8x768xf32>
    %111 = vector.shape_cast %110 : vector<1x8x768xf32> to vector<8x768xf32>
    %112 = vector.extract_strided_slice %111 {offsets = [0, 384], sizes = [8, 384], strides = [1, 1]} : vector<8x768xf32> to vector<8x384xf32>
    %c0_43 = arith.constant 0 : index
    %c0_44 = arith.constant 0 : index
    %c0_45 = arith.constant 0 : index
    %113 = vector.load %arg1[%c0_43, %c0_44, %c0_45] : memref<2x128x384xf32, #tpu.memory_space<vmem>>, vector<1x128x384xf32>
    %114 = vector.shape_cast %113 : vector<1x128x384xf32> to vector<128x384xf32>
    %cst_46 = arith.constant dense<0.000000e+00> : vector<8x384xf32>
    %115 = tpu.matmul %54, %114, %cst_46 {dimension_numbers = #tpu.dot_dimension_numbers<[1], [0], [0], [1], [0, 0, 1, 1], [], []>} : vector<8x128xf32>, vector<128x384xf32>, vector<8x384xf32> -> vector<8x384xf32>
    %c1_47 = arith.constant 1 : index
    %c0_48 = arith.constant 0 : index
    %c0_49 = arith.constant 0 : index
    %116 = vector.load %arg1[%c1_47, %c0_48, %c0_49] : memref<2x128x384xf32, #tpu.memory_space<vmem>>, vector<1x128x384xf32>
    %117 = vector.shape_cast %116 : vector<1x128x384xf32> to vector<128x384xf32>
    %cst_50 = arith.constant dense<0.000000e+00> : vector<8x384xf32>
    %118 = tpu.matmul %85, %117, %cst_50 {dimension_numbers = #tpu.dot_dimension_numbers<[1], [0], [0], [1], [0, 0, 1, 1], [], []>} : vector<8x128xf32>, vector<128x384xf32>, vector<8x384xf32> -> vector<8x384xf32>
    %119 = vector.extract_strided_slice %108 {offsets = [0, 0], sizes = [8, 128], strides = [1, 1]} : vector<8x384xf32> to vector<8x128xf32>
    %120 = vector.extract_strided_slice %115 {offsets = [0, 0], sizes = [8, 128], strides = [1, 1]} : vector<8x384xf32> to vector<8x128xf32>
    %121 = arith.addf %119, %120 : vector<8x128xf32>
    %cst_51 = arith.constant 5.000000e-01 : f32
    %122 = vector.broadcast %cst_51 : f32 to vector<8x128xf32>
    %123 = arith.mulf %122, %121 : vector<8x128xf32>
    %124 = math.tanh %123 : vector<8x128xf32>
    %cst_52 = arith.constant 1.000000e+00 : f32
    %125 = vector.broadcast %cst_52 : f32 to vector<8x128xf32>
    %126 = arith.addf %124, %125 : vector<8x128xf32>
    %cst_53 = arith.constant 5.000000e-01 : f32
    %127 = vector.broadcast %cst_53 : f32 to vector<8x128xf32>
    %128 = arith.mulf %127, %126 : vector<8x128xf32>
    %129 = vector.extract_strided_slice %108 {offsets = [0, 128], sizes = [8, 128], strides = [1, 1]} : vector<8x384xf32> to vector<8x128xf32>
    %130 = vector.extract_strided_slice %115 {offsets = [0, 128], sizes = [8, 128], strides = [1, 1]} : vector<8x384xf32> to vector<8x128xf32>
    %131 = arith.addf %129, %130 : vector<8x128xf32>
    %cst_54 = arith.constant 5.000000e-01 : f32
    %132 = vector.broadcast %cst_54 : f32 to vector<8x128xf32>
    %133 = arith.mulf %132, %131 : vector<8x128xf32>
    %134 = math.tanh %133 : vector<8x128xf32>
    %cst_55 = arith.constant 1.000000e+00 : f32
    %135 = vector.broadcast %cst_55 : f32 to vector<8x128xf32>
    %136 = arith.addf %134, %135 : vector<8x128xf32>
    %cst_56 = arith.constant 5.000000e-01 : f32
    %137 = vector.broadcast %cst_56 : f32 to vector<8x128xf32>
    %138 = arith.mulf %137, %136 : vector<8x128xf32>
    %139 = vector.extract_strided_slice %108 {offsets = [0, 256], sizes = [8, 128], strides = [1, 1]} : vector<8x384xf32> to vector<8x128xf32>
    %140 = vector.extract_strided_slice %115 {offsets = [0, 256], sizes = [8, 128], strides = [1, 1]} : vector<8x384xf32> to vector<8x128xf32>
    %141 = arith.addf %140, %3 : vector<8x128xf32>
    %142 = arith.mulf %128, %141 : vector<8x128xf32>
    %143 = arith.addf %139, %142 : vector<8x128xf32>
    %144 = math.tanh %143 : vector<8x128xf32>
    %cst_57 = arith.constant 1.000000e+00 : f32
    %145 = vector.broadcast %cst_57 : f32 to vector<8x128xf32>
    %146 = arith.subf %145, %138 : vector<8x128xf32>
    %147 = arith.mulf %146, %144 : vector<8x128xf32>
    %148 = arith.mulf %138, %54 : vector<8x128xf32>
    %149 = arith.addf %147, %148 : vector<8x128xf32>
    %150 = vector.extract_strided_slice %112 {offsets = [0, 0], sizes = [8, 128], strides = [1, 1]} : vector<8x384xf32> to vector<8x128xf32>
    %151 = vector.extract_strided_slice %118 {offsets = [0, 0], sizes = [8, 128], strides = [1, 1]} : vector<8x384xf32> to vector<8x128xf32>
    %152 = arith.addf %150, %151 : vector<8x128xf32>
    %cst_58 = arith.constant 5.000000e-01 : f32
    %153 = vector.broadcast %cst_58 : f32 to vector<8x128xf32>
    %154 = arith.mulf %153, %152 : vector<8x128xf32>
    %155 = math.tanh %154 : vector<8x128xf32>
    %cst_59 = arith.constant 1.000000e+00 : f32
    %156 = vector.broadcast %cst_59 : f32 to vector<8x128xf32>
    %157 = arith.addf %155, %156 : vector<8x128xf32>
    %cst_60 = arith.constant 5.000000e-01 : f32
    %158 = vector.broadcast %cst_60 : f32 to vector<8x128xf32>
    %159 = arith.mulf %158, %157 : vector<8x128xf32>
    %160 = vector.extract_strided_slice %112 {offsets = [0, 128], sizes = [8, 128], strides = [1, 1]} : vector<8x384xf32> to vector<8x128xf32>
    %161 = vector.extract_strided_slice %118 {offsets = [0, 128], sizes = [8, 128], strides = [1, 1]} : vector<8x384xf32> to vector<8x128xf32>
    %162 = arith.addf %160, %161 : vector<8x128xf32>
    %cst_61 = arith.constant 5.000000e-01 : f32
    %163 = vector.broadcast %cst_61 : f32 to vector<8x128xf32>
    %164 = arith.mulf %163, %162 : vector<8x128xf32>
    %165 = math.tanh %164 : vector<8x128xf32>
    %cst_62 = arith.constant 1.000000e+00 : f32
    %166 = vector.broadcast %cst_62 : f32 to vector<8x128xf32>
    %167 = arith.addf %165, %166 : vector<8x128xf32>
    %cst_63 = arith.constant 5.000000e-01 : f32
    %168 = vector.broadcast %cst_63 : f32 to vector<8x128xf32>
    %169 = arith.mulf %168, %167 : vector<8x128xf32>
    %170 = vector.extract_strided_slice %112 {offsets = [0, 256], sizes = [8, 128], strides = [1, 1]} : vector<8x384xf32> to vector<8x128xf32>
    %171 = vector.extract_strided_slice %118 {offsets = [0, 256], sizes = [8, 128], strides = [1, 1]} : vector<8x384xf32> to vector<8x128xf32>
    %172 = arith.addf %171, %7 : vector<8x128xf32>
    %173 = arith.mulf %159, %172 : vector<8x128xf32>
    %174 = arith.addf %170, %173 : vector<8x128xf32>
    %175 = math.tanh %174 : vector<8x128xf32>
    %cst_64 = arith.constant 1.000000e+00 : f32
    %176 = vector.broadcast %cst_64 : f32 to vector<8x128xf32>
    %177 = arith.subf %176, %169 : vector<8x128xf32>
    %178 = arith.mulf %177, %175 : vector<8x128xf32>
    %179 = arith.mulf %169, %85 : vector<8x128xf32>
    %180 = arith.addf %178, %179 : vector<8x128xf32>
    %181 = arith.index_cast %c1_i32_37 : i32 to index
    %c0_65 = arith.constant 0 : index
    %c0_66 = arith.constant 0 : index
    %182 = vector.load %arg3[%181, %c0_65, %c0_66] : memref<2x8x1xf32, #tpu.memory_space<vmem>>, vector<1x8x1xf32>
    %183 = vector.shape_cast %182 : vector<1x8x1xf32> to vector<8x1xf32>
    %184 = arith.index_cast %104 : i32 to index
    %c0_67 = arith.constant 0 : index
    %c0_68 = arith.constant 0 : index
    %185 = vector.load %arg3[%184, %c0_67, %c0_68] : memref<2x8x1xf32, #tpu.memory_space<vmem>>, vector<1x8x1xf32>
    %186 = vector.shape_cast %185 : vector<1x8x1xf32> to vector<8x1xf32>
    %187 = vector.broadcast %183 : vector<8x1xf32> to vector<8x128xf32>
    %188 = arith.mulf %187, %149 : vector<8x128xf32>
    %cst_69 = arith.constant dense<0.000000e+00> : vector<128xf32>
    %189 = vector.multi_reduction <add>, %188, %cst_69 [0] : vector<8x128xf32> to vector<128xf32>
    %190 = vector.shape_cast %189 : vector<128xf32> to vector<1x128xf32>
    %191 = arith.index_cast %c1_i32_37 : i32 to index
    %c0_70 = arith.constant 0 : index
    %192 = vector.load %arg4[%191, %c0_70] : memref<2x256xf32, #tpu.memory_space<vmem>>, vector<1x128xf32>
    tpu.vector_store %arg4[%191, %c0_70], %190 {strides = array<i32>} : memref<2x256xf32, #tpu.memory_space<vmem>>, vector<1x128xf32>,
    %193 = vector.broadcast %186 : vector<8x1xf32> to vector<8x128xf32>
    %194 = arith.mulf %193, %180 : vector<8x128xf32>
    %cst_71 = arith.constant dense<0.000000e+00> : vector<128xf32>
    %195 = vector.multi_reduction <add>, %194, %cst_71 [0] : vector<8x128xf32> to vector<128xf32>
    %196 = vector.shape_cast %195 : vector<128xf32> to vector<1x128xf32>
    %197 = arith.index_cast %104 : i32 to index
    %c128_72 = arith.constant 128 : index
    %198 = vector.load %arg4[%197, %c128_72] : memref<2x256xf32, #tpu.memory_space<vmem>>, vector<1x128xf32>
    tpu.vector_store %arg4[%197, %c128_72], %196 {strides = array<i32>} : memref<2x256xf32, #tpu.memory_space<vmem>>, vector<1x128xf32>,
    %c2_i32 = arith.constant 2 : i32
    return
  }
}

</mosaic_0001>

<bundles_post_ra>
// kernel: tpu_custom_call.1
= control target key start
LH: loop header
LB: loop body
LE: loop exit
PB: predicated region body
PF: predicated region fallthrough
CT: control target
= control target key end

     0   :  { %9 = vsyncpa [#allocation3], 0  ;;  %s1961_s0 = inlined_call_operand.hbm [shape: f32[2,8,768], index: 0, kind: input, shape index: {}]   ;;  %s1962_s1 = inlined_call_operand.hbm [shape: f32[2,128,384], index: 1, kind: input, shape index: {}]   ;;  %s1963_s2 = inlined_call_operand.hbm [shape: f32[2,1,128], index: 2, kind: input, shape index: {}]   ;;  %s1964_s3 = inlined_call_operand.hbm [shape: f32[2,8,1], index: 3, kind: input, shape index: {}]   ;;  %s1965_s4 = inlined_call_operand.hbm [shape: f32[2,256], index: 4, kind: output, shape index: {}]  }
   0x1   :  { %10 = vsyncpa [#allocation6], 0 }
   0x2   :  { %11 = vsyncpa [#allocation9], 0 }
   0x3   :  { %12 = vsyncpa [#allocation4], 0  ;;  %s1599_s15 = smov [#allocation5]   ;;  %s1481_s19 = scalar_lea.hbm %s1962_s1, 12288 }
   0x4   :  { %s30_s16 = sshll.u32 %s1599_s15, 4  ;;  %p1482_p0 = scmp.ne.s32.totalorder %s1962_s1, %s1481_s19  ;;  %s31_s16 = int_to_ptr.vmem [resolvable:$true] %s30_s16 }
   0x5   :  { %p1485_p1 = scmp.lt.u32.totalorder %s1481_s19, %s1962_s1 }
   0x7   :  { %p1487_p2 = pnand %p1485_p1, %p1482_p0 }
   0x9   :  { %1490 = shalt.err (!%p1487_p2)
}
   0xa   :  { %s1491_s24 = scalar_lea.vmem %s31_s16, 12288  ;;  %p1496_p4 = scmp.lt.s32.totalorder %s31_s16, %s31_s16 }
   0xb   :  { %p1492_p3 = scmp.ne.s32.totalorder %s31_s16, %s1491_s24  ;;  %p1497_p5 = scmp.lt.s32.totalorder %s1491_s24, %s1491_s24 }
   0xd   :  { %p1498_p6 = por %p1497_p5, %p1496_p4 }
   0xf   :  { %p1499_p7 = pnand %p1498_p6, %p1492_p3 }
  0x11   :  { %1502 = shalt.err (!%p1499_p7)
}
  0x12   :  { %s1600_s25 = smov 384   ;;  %s1601_s26 = smov 24  }
  0x13   :  { %36 = dma.hbm_to_vmem [thread:$0]  %s1962_s1, 12288, %s31_s16, [#allocation6], %s1600_s25, %s1600_s25, %s1601_s26  }
  0x14   :  { %s1602_s29 = smov [#allocation2]   ;;  %s1503_s7 = scalar_lea.hbm %s1961_s0, 1536 }
  0x15   :  { %s18_s30 = sshll.u32 %s1602_s29, 4  ;;  %p1504_p8 = scmp.ne.s32.totalorder %s1961_s0, %s1503_s7  ;;  %s19_s30 = int_to_ptr.vmem [resolvable:$true] %s18_s30 }
  0x16   :  { %p1507_p9 = scmp.lt.u32.totalorder %s1503_s7, %s1961_s0 }
  0x18   :  { %p1509_p10 = pnand %p1507_p9, %p1504_p8 }
  0x1a   :  { %1512 = shalt.err (!%p1509_p10)
}
  0x1b   :  { %s1513_s12 = scalar_lea.vmem %s19_s30, 1536  ;;  %p1518_p12 = scmp.lt.s32.totalorder %s19_s30, %s19_s30 }
  0x1c   :  { %p1514_p11 = scmp.ne.s32.totalorder %s19_s30, %s1513_s12  ;;  %p1519_p13 = scmp.lt.s32.totalorder %s1513_s12, %s1513_s12 }
  0x1e   :  { %p1520_p0 = por %p1519_p13, %p1518_p12 }
  0x20   :  { %p1521_p1 = pnand %p1520_p0, %p1514_p11 }
  0x22   :  { %1524 = shalt.err (!%p1521_p1)
}
  0x23   :  { %s1603_s1 = smov 768   ;;  %s1604_s13 = smov 48  }
  0x24   :  { %24 = dma.hbm_to_vmem [thread:$0]  %s1961_s0, 1536, %s19_s30, [#allocation3], %s1603_s1, %s1603_s1, %s1604_s13  }
  0x25   :  { %s1605_s16 = smov [#allocation7]   ;;  %s1525_s20 = scalar_lea.hbm %s1963_s2, 32 }
  0x26   :  { %s42_s17 = sshll.u32 %s1605_s16, 4  ;;  %p1526_p2 = scmp.ne.s32.totalorder %s1963_s2, %s1525_s20  ;;  %s43_s17 = int_to_ptr.vmem [resolvable:$true] %s42_s17 }
  0x27   :  { %p1529_p3 = scmp.lt.u32.totalorder %s1525_s20, %s1963_s2 }
  0x29   :  { %p1531_p4 = pnand %p1529_p3, %p1526_p2 }
  0x2b   :  { %1534 = shalt.err (!%p1531_p4)
}
  0x2c   :  { %s1535_s25 = scalar_lea.vmem %s43_s17, 32  ;;  %p1540_p6 = scmp.lt.s32.totalorder %s43_s17, %s43_s17 }
  0x2d   :  { %p1536_p5 = scmp.ne.s32.totalorder %s43_s17, %s1535_s25  ;;  %p1541_p7 = scmp.lt.s32.totalorder %s1535_s25, %s1535_s25 }
  0x2f   :  { %p1542_p8 = por %p1541_p7, %p1540_p6 }
  0x31   :  { %p1543_p9 = pnand %p1542_p8, %p1536_p5 }
  0x33   :  { %1546 = shalt.err (!%p1543_p9)
}
  0x34   :  { %s1606_s0 = smov 16   ;;  %s1607_s26 = smov 1  }
  0x35   :  { %48 = dma.hbm_to_vmem [thread:$0]  %s1963_s2, 32, %s43_s17, [#allocation6], %s1606_s0, %s1606_s0, %s1607_s26  }
  0x36   :  { %s1608_s29 = smov [#allocation8]   ;;  %s1547_s7 = scalar_lea.hbm %s1964_s3, 256 }
  0x37   :  { %s54_s30 = sshll.u32 %s1608_s29, 4  ;;  %p1548_p10 = scmp.ne.s32.totalorder %s1964_s3, %s1547_s7  ;;  %s55_s30 = int_to_ptr.vmem [resolvable:$true] %s54_s30 }
  0x38   :  { %p1551_p11 = scmp.lt.u32.totalorder %s1547_s7, %s1964_s3 }
  0x3a   :  { %p1553_p12 = pnand %p1551_p11, %p1548_p10 }
  0x3c   :  { %1556 = shalt.err (!%p1553_p12)
}
  0x3d   :  { %s1557_s12 = scalar_lea.vmem %s55_s30, 256  ;;  %p1562_p0 = scmp.lt.s32.totalorder %s55_s30, %s55_s30 }
  0x3e   :  { %p1558_p13 = scmp.ne.s32.totalorder %s55_s30, %s1557_s12  ;;  %p1563_p1 = scmp.lt.s32.totalorder %s1557_s12, %s1557_s12 }
  0x40   :  { %p1564_p2 = por %p1563_p1, %p1562_p0 }
  0x42   :  { %p1565_p3 = pnand %p1564_p2, %p1558_p13 }
  0x44   :  { %1568 = shalt.err (!%p1565_p3)
}
  0x45   :  { %s1609_s2 = smov 128   ;;  %s1610_s1 = smov 8  }
  0x46   :  { %60 = dma.hbm_to_vmem [thread:$0]  %s1964_s3, 256, %s55_s30, [#allocation9], %s1609_s2, %s1609_s2, %s1610_s1  }
  0x47   :  { %1591 = dma.done.wait [#allocation3], 1536  }
  0x48   :  { %1592 = vsyncadd [#allocation3], 4294965760 }
  0x49   :  { %1593 = dma.done.wait [#allocation6], 12320  }
  0x4a   :  { %1594 = vsyncadd [#allocation6], 4294954976 }
  0x4b   :  { %1595 = dma.done.wait [#allocation9], 256  }
  0x4c   :  { %1596 = vsyncadd [#allocation9], 4294967040  ;;  %v1611_v0 = vmov 0.0|0.0   ;;  %v1612_v1 = vmov 0.0   ;;  %vm1613_vm0 = vmmov 0   ;;  %v1614_v2 = vmov 0  }
  0x4d   :  { %1246 = vmatprep.subr.bf16.mxu1 %v1611_v0  ;;  %207 = vmatprep.mubr.f32.mxu0 %v1612_v1  ;;  %v96_v3 = vld [vmem:[#allocation5 + $0x8] sm:$0xff]  ;;  %v99_v4 = vld [vmem:[#allocation5 + $0x20] sm:$0xff]  ;;  %v98_v7 = vld [vmem:[#allocation5 + $0x18] sm:$0xff]  ;;  %s1615_s3 = smov [#allocation10]  }
  0x4e   :  { %1106 = vmatprep.mubr.msk.f32.mxu1 %vm1613_vm0, %v1612_v1  ;;  %1455 = vset.pattern.permute.xlu0 %v1614_v2  ;;  %v95_v5 = vld [vmem:[#allocation5] sm:$0xff]  ;;  %v1693_v6 = vpack.c.bf16 %v99_v4, %v96_v3  ;;  %v102_v8 = vld [vmem:[#allocation5 + $0x38] sm:$0xff]  ;;  %v105_v9 = vld [vmem:[#allocation5 + $0x50] sm:$0xff]  ;;  %s993_s15 = sshll.u32 %s1615_s3, 4  ;;  %s994_s15 = int_to_ptr.vmem [resolvable:$true] %s993_s15 }
  0x4f   :  { %1456 = vset.pattern.permute.xlu1 %v1614_v2  ;;  %v1695_v10 = vpack.c.bf16 %v98_v7, %v95_v5  ;;  %v1697_v11 = vpack.c.bf16 %v105_v9, %v102_v8  ;;  %v101_v12 = vld [vmem:[#allocation5 + $0x30] sm:$0xff]  ;;  %v104_v13 = vld [vmem:[#allocation5 + $0x48] sm:$0xff]  ;;  %v111_v15 = vld [vmem:[#allocation5 + $0x80] sm:$0xff]  ;;  %s1569_s16 = scalar_lea.vmem %s994_s15, 64  ;;  %p1574_p5 = scmp.lt.s32.totalorder %s994_s15, %s994_s15 }
  0x50   :  { %v108_v14 = vld [vmem:[#allocation5 + $0x68] sm:$0xff]  ;;  %1215 = vmatprep.subr.bf16.mxu0 %v1693_v6  ;;  %v1701_v16 = vpack.c.bf16 %v104_v13, %v101_v12  ;;  %v107_v18 = vld [vmem:[#allocation5 + $0x60] sm:$0xff]  ;;  %v110_v19 = vld [vmem:[#allocation5 + $0x78] sm:$0xff]  ;;  %p1570_p4 = scmp.ne.s32.totalorder %s994_s15, %s1569_s16  ;;  %p1575_p6 = scmp.lt.s32.totalorder %s1569_s16, %s1569_s16 }
  0x51   :  { %1217 = vmatpush1.bf16.msra.mxu0 %v1695_v10  ;;  %v1704_v17 = vpack.c.bf16 %v111_v15, %v108_v14  ;;  %v114_v20 = vld [vmem:[#allocation5 + $0x98] sm:$0xff]  ;;  %v117_v21 = vld [vmem:[#allocation5 + $0xb0] sm:$0xff]  ;;  %v100_v23 = vld [vmem:[#allocation5 + $0x28] sm:$0xff]  ;;  %v1707_v24 = vpack.c.bf16 %v110_v19, %v107_v18 }
  0x52   :  { %1219 = vmatprep.subr.bf16.mxu0 %v1697_v11  ;;  %v97_v22 = vld [vmem:[#allocation5 + $0x10] sm:$0xff]  ;;  %v103_v26 = vld [vmem:[#allocation5 + $0x40] sm:$0xff]  ;;  %v1712_v27 = vpack.c.bf16 %v117_v21, %v114_v20  ;;  %v116_v29 = vld [vmem:[#allocation5 + $0xa8] sm:$0xff]  ;;  %p1576_p7 = por %p1575_p6, %p1574_p5 }
  0x53   :  { %v1709_v25 = vpack.c.bf16 %v100_v23, %v97_v22  ;;  %v113_v28 = vld [vmem:[#allocation5 + $0x90] sm:$0xff]  ;;  %v106_v30 = vld [vmem:[#allocation5 + $0x58] sm:$0xff]  ;;  %v120_v31 = vld [vmem:[#allocation5 + $0xc8] sm:$0xff] }
  0x54   :  { %v123_v32 = vld [vmem:[#allocation5 + $0xe0] sm:$0xff]  ;;  %v1715_v33 = vpack.c.bf16 %v106_v30, %v103_v26  ;;  %v109_v34 = vld [vmem:[#allocation5 + $0x70] sm:$0xff]  ;;  %v112_v35 = vld [vmem:[#allocation5 + $0x88] sm:$0xff]  ;;  %v1719_v36 = vpack.c.bf16 %v116_v29, %v113_v28  ;;  %p1577_p8 = pnand %p1576_p7, %p1570_p4 }
  0x55   :  { %1221 = vmatpush1.bf16.msra.mxu0 %v1701_v16  ;;  %1248 = vmatpush3.bf16.msra.mxu1 %v1709_v25  ;;  %v1722_v37 = vpack.c.bf16 %v123_v32, %v120_v31  ;;  %v119_v38 = vld [vmem:[#allocation5 + $0xc0] sm:$0xff]  ;;  %v122_v39 = vld [vmem:[#allocation5 + $0xd8] sm:$0xff]  ;;  %v129_v41 = vld [vmem:[#allocation5 + $0x110] sm:$0xff]  ;;  %v1725_v42 = vpack.c.bf16 %v112_v35, %v109_v34 }
  0x56   :  { %1223 = vmatprep.subr.bf16.mxu0 %v1704_v17  ;;  %1249 = vmatprep.subr.bf16.mxu1 %v1611_v0  ;;  %v126_v40 = vld [vmem:[#allocation5 + $0xf8] sm:$0xff]  ;;  %v115_v43 = vld [vmem:[#allocation5 + $0xa0] sm:$0xff]  ;;  %v1729_v45 = vpack.c.bf16 %v122_v39, %v119_v38  ;;  %v125_v47 = vld [vmem:[#allocation5 + $0xf0] sm:$0xff] }
  0x57   :  { %v118_v44 = vld [vmem:[#allocation5 + $0xb8] sm:$0xff]  ;;  %v1732_v46 = vpack.c.bf16 %v129_v41, %v126_v40  ;;  %v128_v48 = vld [vmem:[#allocation5 + $0x108] sm:$0xff]  ;;  %v135_v50 = vld [vmem:[#allocation5 + $0x140] sm:$0xff] }
  0x58   :  { %v132_v49 = vld [vmem:[#allocation5 + $0x128] sm:$0xff]  ;;  %v1735_v51 = vpack.c.bf16 %v118_v44, %v115_v43  ;;  %v121_v52 = vld [vmem:[#allocation5 + $0xd0] sm:$0xff]  ;;  %v1739_v54 = vpack.c.bf16 %v128_v48, %v125_v47  ;;  %v131_v56 = vld [vmem:[#allocation5 + $0x120] sm:$0xff] }
  0x59   :  { %1225 = vmatpush1.bf16.msra.mxu0 %v1707_v24  ;;  %1251 = vmatpush3.bf16.msra.mxu1 %v1715_v33  ;;  %v124_v53 = vld [vmem:[#allocation5 + $0xe8] sm:$0xff]  ;;  %v1742_v55 = vpack.c.bf16 %v135_v50, %v132_v49  ;;  %v134_v57 = vld [vmem:[#allocation5 + $0x138] sm:$0xff]  ;;  %v141_v59 = vld [vmem:[#allocation5 + $0x170] sm:$0xff] }
  0x5a   :  { %1227 = vmatprep.subr.bf16.mxu0 %v1712_v27  ;;  %1252 = vmatprep.subr.bf16.mxu1 %v1611_v0  ;;  %v138_v58 = vld [vmem:[#allocation5 + $0x158] sm:$0xff]  ;;  %v1745_v60 = vpack.c.bf16 %v124_v53, %v121_v52  ;;  %v127_v61 = vld [vmem:[#allocation5 + $0x100] sm:$0xff]  ;;  %v1749_v63 = vpack.c.bf16 %v134_v57, %v131_v56  ;;  %v137_v3 = vld [vmem:[#allocation5 + $0x150] sm:$0xff] }
  0x5b   :  { %v130_v62 = vld [vmem:[#allocation5 + $0x118] sm:$0xff]  ;;  %v1752_v2 = vpack.c.bf16 %v141_v59, %v138_v58  ;;  %v140_v4 = vld [vmem:[#allocation5 + $0x168] sm:$0xff]  ;;  %v289_v7 = vld [vmem:[#allocation5 + $0x1a0] sm:$0xff] }
  0x5c   :  { %v286_v5 = vld [vmem:[#allocation5 + $0x188] sm:$0xff]  ;;  %v1755_v8 = vpack.c.bf16 %v130_v62, %v127_v61  ;;  %v133_v9 = vld [vmem:[#allocation5 + $0x130] sm:$0xff]  ;;  %v1759_v13 = vpack.c.bf16 %v140_v4, %v137_v3  ;;  %v285_v15 = vld [vmem:[#allocation5 + $0x180] sm:$0xff] }
  0x5d   :  { %1229 = vmatpush1.bf16.msra.mxu0 %v1719_v36  ;;  %1254 = vmatpush3.bf16.msra.mxu1 %v1725_v42  ;;  %v136_v12 = vld [vmem:[#allocation5 + $0x148] sm:$0xff]  ;;  %v1762_v14 = vpack.c.bf16 %v289_v7, %v286_v5  ;;  %v288_v18 = vld [vmem:[#allocation5 + $0x198] sm:$0xff]  ;;  %v295_v20 = vld [vmem:[#allocation5 + $0x1d0] sm:$0xff] }
  0x5e   :  { %1231 = vmatprep.subr.bf16.mxu0 %v1722_v37  ;;  %1255 = vmatprep.subr.bf16.mxu1 %v1611_v0  ;;  %v292_v19 = vld [vmem:[#allocation5 + $0x1b8] sm:$0xff]  ;;  %v1765_v21 = vpack.c.bf16 %v136_v12, %v133_v9  ;;  %v139_v22 = vld [vmem:[#allocation5 + $0x160] sm:$0xff]  ;;  %v1769_v26 = vpack.c.bf16 %v288_v18, %v285_v15  ;;  %v291_v30 = vld [vmem:[#allocation5 + $0x1b0] sm:$0xff] }
  0x5f   :  { %v142_v23 = vld [vmem:[#allocation5 + $0x178] sm:$0xff]  ;;  %v510_v28 = vld [vmem:[#allocation8] sm:$0xff]  ;;  %v1772_v29 = vpack.c.bf16 %v295_v20, %v292_v19  ;;  %v512_v32 = vld [vmem:[#allocation8 + $0x8] sm:$0xff] }
  0x60   :  { %v294_v31 = vld [vmem:[#allocation5 + $0x1c8] sm:$0xff]  ;;  %515 = vperm.xlu0 %1455, %v510_v28   ;;  %v301_v35 = vld [vmem:[#allocation5 + $0x200] sm:$0xff]  ;;  %v1775_v38 = vpack.c.bf16 %v142_v23, %v139_v22  ;;  %963 = vperm.xlu1 %1456, %v512_v32   ;;  %v287_v39 = vld [vmem:[#allocation5 + $0x190] sm:$0xff] }
  0x61   :  { %1233 = vmatpush1.bf16.msra.mxu0 %v1729_v45  ;;  %1257 = vmatpush3.bf16.msra.mxu1 %v1735_v51  ;;  %v298_v34 = vld [vmem:[#allocation5 + $0x1e8] sm:$0xff]  ;;  %v1780_v41 = vpack.c.bf16 %v294_v31, %v291_v30  ;;  %v297_v44 = vld [vmem:[#allocation5 + $0x1e0] sm:$0xff]  ;;  %v300_v47 = vld [vmem:[#allocation5 + $0x1f8] sm:$0xff] }
  0x62   :  { %1235 = vmatprep.subr.bf16.mxu0 %v1732_v46  ;;  %1258 = vmatprep.subr.bf16.mxu1 %v1611_v0  ;;  %v290_v40 = vld [vmem:[#allocation5 + $0x1a8] sm:$0xff]  ;;  %v1784_v43 = vpack.c.bf16 %v301_v35, %v298_v34  ;;  %v304_v48 = vld [vmem:[#allocation5 + $0x218] sm:$0xff]  ;;  %v307_v49 = vld [vmem:[#allocation5 + $0x230] sm:$0xff]  ;;  %v1791_v56 = vpack.c.bf16 %v300_v47, %v297_v44 }
  0x63   :  { %v1787_v50 = vpack.c.bf16 %v290_v40, %v287_v39  ;;  %v293_v52 = vld [vmem:[#allocation5 + $0x1c0] sm:$0xff]  ;;  %v296_v53 = vld [vmem:[#allocation5 + $0x1d8] sm:$0xff]  ;;  %v1794_v57 = vpack.c.bf16 %v307_v49, %v304_v48  ;;  %v303_v58 = vld [vmem:[#allocation5 + $0x210] sm:$0xff] }
  0x64   :  { %528 = vperm.xlu0 %1455, %v512_v32   ;;  %976 = vperm.xlu1 %1456, %v510_v28   ;;  %v306_v59 = vld [vmem:[#allocation5 + $0x228] sm:$0xff]  ;;  %v313_v62 = vld [vmem:[#allocation5 + $0x260] sm:$0xff]  ;;  %v1798_v3 = vpack.c.bf16 %v296_v53, %v293_v52  ;;  %v299_v4 = vld [vmem:[#allocation5 + $0x1f0] sm:$0xff] }
  0x65   :  { %1237 = vmatpush1.bf16.msra.mxu0 %v1739_v54  ;;  %1260 = vmatpush3.bf16.msra.mxu1 %v1745_v60  ;;  %v310_v61 = vld [vmem:[#allocation5 + $0x248] sm:$0xff]  ;;  %v1804_v7 = vpack.c.bf16 %v306_v59, %v303_v58  ;;  %v309_v12 = vld [vmem:[#allocation5 + $0x240] sm:$0xff]  ;;  %v312_v15 = vld [vmem:[#allocation5 + $0x258] sm:$0xff] }
  0x66   :  { %1239 = vmatprep.subr.bf16.mxu0 %v1742_v55  ;;  %1261 = vmatprep.subr.bf16.mxu1 %v1611_v0  ;;  %v302_v5 = vld [vmem:[#allocation5 + $0x208] sm:$0xff]  ;;  %v1807_v9 = vpack.c.bf16 %v313_v62, %v310_v61  ;;  %v316_v18 = vld [vmem:[#allocation5 + $0x278] sm:$0xff]  ;;  %v319_v19 = vld [vmem:[#allocation5 + $0x290] sm:$0xff]  ;;  %v1814_v28 = vpack.c.bf16 %v312_v15, %v309_v12 }
  0x67   :  { %v1810_v20 = vpack.c.bf16 %v302_v5, %v299_v4  ;;  %v305_v22 = vld [vmem:[#allocation5 + $0x220] sm:$0xff]  ;;  %v308_v23 = vld [vmem:[#allocation5 + $0x238] sm:$0xff]  ;;  %v1817_v30 = vpack.c.bf16 %v319_v19, %v316_v18  ;;  %v315_v31 = vld [vmem:[#allocation5 + $0x270] sm:$0xff] }
  0x68   :  { %v318_v32 = vld [vmem:[#allocation5 + $0x288] sm:$0xff]  ;;  %v325_v35 = vld [vmem:[#allocation5 + $0x2c0] sm:$0xff]  ;;  %v1820_v39 = vpack.c.bf16 %v308_v23, %v305_v22  ;;  %v311_v40 = vld [vmem:[#allocation5 + $0x250] sm:$0xff] }
  0x69   :  { %1241 = vmatpush1.bf16.msra.mxu0 %v1749_v63  ;;  %1263 = vmatpush3.bf16.msra.mxu1 %v1755_v8  ;;  %v322_v34 = vld [vmem:[#allocation5 + $0x2a8] sm:$0xff]  ;;  %v1824_v47 = vpack.c.bf16 %v318_v32, %v315_v31  ;;  %v321_v49 = vld [vmem:[#allocation5 + $0x2a0] sm:$0xff]  ;;  %v324_v52 = vld [vmem:[#allocation5 + $0x2b8] sm:$0xff] }
  0x6a   :  { %1243 = vmatprep.subr.bf16.mxu0 %v1752_v2  ;;  %1264 = vmatprep.subr.bf16.mxu1 %v1611_v0  ;;  %v314_v44 = vld [vmem:[#allocation5 + $0x268] sm:$0xff]  ;;  %v1827_v48 = vpack.c.bf16 %v325_v35, %v322_v34  ;;  %v328_v53 = vld [vmem:[#allocation5 + $0x2d8] sm:$0xff]  ;;  %v331_v58 = vld [vmem:[#allocation5 + $0x2f0] sm:$0xff]  ;;  %v1834_v4 = vpack.c.bf16 %v324_v52, %v321_v49 }
  0x6b   :  { %v1830_v59 = vpack.c.bf16 %v314_v44, %v311_v40  ;;  %v317_v61 = vld [vmem:[#allocation5 + $0x280] sm:$0xff]  ;;  %v320_v62 = vld [vmem:[#allocation5 + $0x298] sm:$0xff]  ;;  %v1837_v5 = vpack.c.bf16 %v331_v58, %v328_v53  ;;  %v327_v12 = vld [vmem:[#allocation5 + $0x2d0] sm:$0xff] }
  0x6c   :  { %v330_v15 = vld [vmem:[#allocation5 + $0x2e8] sm:$0xff]  ;;  %v1840_v18 = vpack.c.bf16 %v320_v62, %v317_v61  ;;  %v323_v19 = vld [vmem:[#allocation5 + $0x2b0] sm:$0xff]  ;;  %v329_v32 = vld [vmem:[#allocation5 + $0x2e0] sm:$0xff] }
  0x6d   :  { %1245 = vmatpush1.bf16.msra.mxu0 %v1759_v13  ;;  %1266 = vmatpush3.bf16.msra.mxu1 %v1765_v21  ;;  %v326_v22 = vld [vmem:[#allocation5 + $0x2c8] sm:$0xff]  ;;  %v1844_v23 = vpack.c.bf16 %v330_v15, %v327_v12  ;;  %v332_v34 = vld [vmem:[#allocation5 + $0x2f8] sm:$0xff]  ;;  %v93_v40 = vld [vmem:[#allocation2 + $0x50] sm:$0xff] }
  0x6e   :  { %1271 = vmatprep.subr.bf16.mxu0 %v1762_v14  ;;  %1267 = vmatprep.subr.bf16.mxu1 %v1611_v0  ;;  %v1848_v31 = vpack.c.bf16 %v326_v22, %v323_v19  ;;  %v1854_v35 = vpack.c.bf16 %v332_v34, %v329_v32 }
  0x70   :  { %208 = vmatmul.mubr.f32.vlgmr.msra.gmra.mrb[0].mxu0 %v1612_v1 }
  0x71   :  { %1273 = vmatpush1.bf16.msra.mxu0 %v1769_v26  ;;  %397 = vmatprep.mubr.f32.mxu0 %v1612_v1 }
  0x72   :  { %1275 = vmatprep.subr.bf16.mxu0 %v1772_v29  ;;  %1269 = vmatpush3.bf16.msra.mxu1 %v1775_v38 }
  0x73   :  { %1302 = vmatprep.subr.bf16.mxu1 %v1611_v0 }
  0x75   :  { %1277 = vmatpush1.bf16.msra.mxu0 %v1780_v41  ;;  %1107 = vmatmul.mubr.f32.vlgmr.msra.gmra.mrb[0].mxu1 %v1612_v1 }
  0x76   :  { %1279 = vmatprep.subr.bf16.mxu0 %v1784_v43  ;;  %1304 = vmatpush3.bf16.msra.mxu1 %v1787_v50 }
  0x77   :  { %1141 = vmatprep.mubr.msk.f32.mxu1 %vm1613_vm0, %v1612_v1  ;;  %1305 = vmatprep.subr.bf16.mxu1 %v1611_v0 }
  0x79   :  { %1281 = vmatpush1.bf16.msra.mxu0 %v1791_v56 }
  0x7a   :  { %1283 = vmatprep.subr.bf16.mxu0 %v1794_v57  ;;  %1307 = vmatpush3.bf16.msra.mxu1 %v1798_v3 }
  0x7b   :  { %1308 = vmatprep.subr.bf16.mxu1 %v1611_v0 }
  0x7d   :  { %1285 = vmatpush1.bf16.msra.mxu0 %v1804_v7 }
  0x7e   :  { %1287 = vmatprep.subr.bf16.mxu0 %v1807_v9  ;;  %1310 = vmatpush3.bf16.msra.mxu1 %v1810_v20 }
  0x7f   :  { %1311 = vmatprep.subr.bf16.mxu1 %v1611_v0 }
  0x81   :  { %1289 = vmatpush1.bf16.msra.mxu0 %v1814_v28 }
  0x82   :  { %1291 = vmatprep.subr.bf16.mxu0 %v1817_v30  ;;  %1313 = vmatpush3.bf16.msra.mxu1 %v1820_v39 }
  0x83   :  { %1314 = vmatprep.subr.bf16.mxu1 %v1611_v0 }
  0x85   :  { %1293 = vmatpush1.bf16.msra.mxu0 %v1824_v47 }
  0x86   :  { %1295 = vmatprep.subr.bf16.mxu0 %v1827_v48  ;;  %1316 = vmatpush3.bf16.msra.mxu1 %v1830_v59 }
  0x87   :  { %1317 = vmatprep.subr.bf16.mxu1 %v1611_v0 }
  0x89   :  { %1297 = vmatpush1.bf16.msra.mxu0 %v1834_v4 }
  0x8a   :  { %1299 = vmatprep.subr.bf16.mxu0 %v1837_v5  ;;  %1319 = vmatpush3.bf16.msra.mxu1 %v1840_v18 }
  0x8b   :  { %1320 = vmatprep.subr.bf16.mxu1 %v1611_v0 }
  0x8d   :  { %1301 = vmatpush1.bf16.msra.mxu0 %v1844_v23 }
  0x8e   :  { %1327 = vmatprep.subr.bf16.mxu0 %v1693_v6  ;;  %1322 = vmatpush3.bf16.msra.mxu1 %v1848_v31  ;;  %v88_v6 = vld [vmem:[#allocation2] sm:$0xff] }
  0x8f   :  { %1323 = vmatprep.subr.bf16.mxu1 %v1611_v0 }
  0x90   :  { %398 = vmatmul.mubr.f32.vlgmr.msra.gmra.mrb[2].mxu0 %v1612_v1 }
  0x91   :  { %1329 = vmatpush1.bf16.msra.mxu0 %v1695_v10  ;;  %657 = vmatprep.mubr.f32.mxu0 %v1612_v1 }
  0x92   :  { %1331 = vmatprep.subr.bf16.mxu0 %v1697_v11  ;;  %1325 = vmatpush3.bf16.msra.mxu1 %v1854_v35 }
  0x93   :  { %1358 = vmatprep.subr.bf16.mxu1 %v1611_v0 }
  0x95   :  { %1333 = vmatpush1.bf16.msra.mxu0 %v1701_v16  ;;  %1142 = vmatmul.mubr.f32.vlgmr.msra.gmra.mrb[2].mxu1 %v1612_v1  ;;  %v89_v16 = vld [vmem:[#allocation2 + $0x8] sm:$0xff] }
  0x96   :  { %1335 = vmatprep.subr.bf16.mxu0 %v1704_v17  ;;  %1360 = vmatpush3.bf16.msra.mxu1 %v1709_v25 }
  0x97   :  { %1176 = vmatprep.mubr.msk.f32.mxu1 %vm1613_vm0, %v1612_v1  ;;  %1361 = vmatprep.subr.bf16.mxu1 %v1611_v0 }
  0x99   :  { %1337 = vmatpush1.bf16.msra.mxu0 %v1707_v24 }
  0x9a   :  { %1339 = vmatprep.subr.bf16.mxu0 %v1712_v27  ;;  %1363 = vmatpush3.bf16.msra.mxu1 %v1715_v33 }
  0x9b   :  { %1364 = vmatprep.subr.bf16.mxu1 %v1611_v0 }
  0x9d   :  { %1341 = vmatpush1.bf16.msra.mxu0 %v1719_v36 }
  0x9e   :  { %1343 = vmatprep.subr.bf16.mxu0 %v1722_v37  ;;  %1366 = vmatpush3.bf16.msra.mxu1 %v1725_v42  ;;  %v1896_v37 = vld [vmem:[#allocation7] ss:$0 sm:$0xff] }
  0x9f   :  { %1367 = vmatprep.subr.bf16.mxu1 %v1611_v0 }
  0xa1   :  { %1345 = vmatpush1.bf16.msra.mxu0 %v1729_v45 }
  0xa2   :  { %1347 = vmatprep.subr.bf16.mxu0 %v1732_v46  ;;  %1369 = vmatpush3.bf16.msra.mxu1 %v1735_v51 }
  0xa3   :  { %1370 = vmatprep.subr.bf16.mxu1 %v1611_v0 }
  0xa5   :  { %1349 = vmatpush1.bf16.msra.mxu0 %v1739_v54  ;;  %v90_v54 = vld [vmem:[#allocation2 + $0x10] sm:$0xff] }
  0xa6   :  { %1351 = vmatprep.subr.bf16.mxu0 %v1742_v55  ;;  %1372 = vmatpush3.bf16.msra.mxu1 %v1745_v60 }
  0xa7   :  { %1373 = vmatprep.subr.bf16.mxu1 %v1611_v0 }
  0xa9   :  { %1353 = vmatpush1.bf16.msra.mxu0 %v1749_v63 }
  0xaa   :  { %1355 = vmatprep.subr.bf16.mxu0 %v1752_v2  ;;  %1375 = vmatpush3.bf16.msra.mxu1 %v1755_v8 }
  0xab   :  { %1376 = vmatprep.subr.bf16.mxu1 %v1611_v0 }
  0xad   :  { %1357 = vmatpush1.bf16.msra.mxu0 %v1759_v13  ;;  %v92_v13 = vld [vmem:[#allocation2 + $0x48] sm:$0xff] }
  0xae   :  { %1383 = vmatprep.subr.bf16.mxu0 %v1762_v14  ;;  %1378 = vmatpush3.bf16.msra.mxu1 %v1765_v21 }
  0xaf   :  { %1379 = vmatprep.subr.bf16.mxu1 %v1611_v0 }
  0xb2   :  { %1381 = vmatpush3.bf16.msra.mxu1 %v1775_v38 }
  0xb3   :  { %1414 = vmatprep.subr.bf16.mxu1 %v1611_v0 }
  0xdf   :  { %v516_v62 = vpop.permute.xlu0 %515 }
 0x143   :  { %v209_v10 = vpop.f32.mrb[0].mxu0 }
 0x144   :  { %v474_v11 = vadd.f32 %v209_v10, %v88_v6  ;;  %v211_v17 = vpop.f32.mrb[1].mxu0 }
 0x145   :  { %v479_v25 = vadd.f32 %v211_v17, %v89_v16 }
 0x146   :  { %v475_v24 = vmul.f32 0.5, %v474_v11 }
 0x147   :  { %v480_v36 = vmul.f32 0.5, %v479_v25  ;;  %v539_v25 = vld [vmem:[#allocation2 + $0x30] sm:$0xff] }
 0x148   :  { %1457 = vtanh.f32 %v475_v24  ;;  %v280_v27 = vpop.f32.mrb[0].mxu1 }
 0x149   :  { %v1108_v33 = vpop.f32.mrb[1].mxu1  ;;  %1459 = vtanh.f32 %v480_v36  ;;  %v484_v46 = vadd.f32 %v1896_v37, %v280_v27 }
 0x14a   :  { %v540_v33 = vld [vmem:[#allocation2 + $0x38] sm:$0xff] }
 0x152   :  { %v1458_v42 = vpop.eup %1457 }
 0x153   :  { %v477_v45 = vadd.f32 1.0, %v1458_v42  ;;  %v1460_v60 = vpop.eup %1459 }
 0x154   :  { %v482_v2 = vadd.f32 1.0, %v1460_v60 }
 0x155   :  { %v478_v51 = vmul.f32 0.5, %v477_v45 }
 0x156   :  { %v483_v8 = vmul.f32 0.5, %v482_v2  ;;  %v541_v2 = vld [vmem:[#allocation2 + $0x40] sm:$0xff] }
 0x157   :  { %v485_v55 = vmul.f32 %v484_v46, %v478_v51 }
 0x158   :  { %v488_v21 = vsub.f32 1.0, %v483_v8  ;;  %v490_v52 = vmul.f32 0.0, %v483_v8 }
 0x159   :  { %v486_v63 = vadd.f32 %v485_v55, %v90_v54 }
 0x15b   :  { %1461 = vtanh.f32 %v486_v63 }
 0x163   :  { %v399_v14 = vpop.f32.mrb[2].mxu0 }
 0x164   :  { %v492_v38 = vadd.f32 %v399_v14, %v92_v13  ;;  %v401_v44 = vpop.f32.mrb[3].mxu0 }
 0x165   :  { %v1462_v49 = vpop.eup %1461  ;;  %v497_v61 = vadd.f32 %v401_v44, %v93_v40  ;;  %v542_v40 = vld [vmem:[#allocation2 + $0x18] sm:$0xff] }
 0x166   :  { %v493_v53 = vmul.f32 0.5, %v492_v38  ;;  %v489_v58 = vmul.f32 %v1462_v49, %v488_v21 }
 0x167   :  { %v498_v32 = vmul.f32 0.5, %v497_v61 }
 0x168   :  { %1463 = vtanh.f32 %v493_v53  ;;  %v1899_v12 = vadd.f32 %v490_v52, %v489_v58  ;;  %v470_v15 = vpop.f32.mrb[2].mxu1  ;;  %v543_v53 = vld [vmem:[#allocation2 + $0x20] sm:$0xff] }
 0x169   :  { %v1143_v22 = vpop.f32.mrb[3].mxu1  ;;  %1465 = vtanh.f32 %v498_v32 }
 0x16a   :  { %v518_v19 = vmul.f32 %v516_v62, %v1899_v12  ;;  %658 = vmatmul.mubr.f32.vlgmr.msra.gmra.mrb[4].mxu0 %v1899_v12  ;;  %1177 = vmatmul.mubr.f32.vlgmr.msra.gmra.mrb[4].mxu1 %v1899_v12 }
 0x16b   :  { %1385 = vmatpush1.bf16.msra.mxu0 %v1769_v26  ;;  %1416 = vmatpush3.bf16.msra.mxu1 %v1787_v50  ;;  %v1915_v26 = vld [vmem:[#allocation7 + $0x1] ss:$0 sm:$0xff] }
 0x16c   :  { %v519_v34 = vrot.slane %v518_v19, 4  ;;  %1387 = vmatprep.subr.bf16.mxu0 %v1772_v29  ;;  %1417 = vmatprep.subr.bf16.mxu1 %v1611_v0  ;;  %v502_v16 = vadd.f32 %v1915_v26, %v470_v15 }
 0x16d   :  { %846 = vmatprep.mubr.f32.mxu0 %v1612_v1  ;;  %1211 = vmatprep.mubr.msk.f32.mxu1 %vm1613_vm0, %v1612_v1 }
 0x16e   :  { %v520_v6 = vadd.f32 %v519_v34, %v518_v19  ;;  %v964_v34 = vpop.permute.xlu1 %963 }
 0x16f   :  { %1389 = vmatpush1.bf16.msra.mxu0 %v1780_v41  ;;  %1419 = vmatpush3.bf16.msra.mxu1 %v1798_v3  ;;  %v94_v3 = vld [vmem:[#allocation2 + $0x58] sm:$0xff] }
 0x170   :  { %v521_v10 = vrot.slane %v520_v6, 2  ;;  %1391 = vmatprep.subr.bf16.mxu0 %v1784_v43  ;;  %1420 = vmatprep.subr.bf16.mxu1 %v1611_v0 }
 0x172   :  { %v1464_v29 = vpop.eup %1463  ;;  %v522_v50 = vadd.f32 %v521_v10, %v520_v6 }
 0x173   :  { %v495_v11 = vadd.f32 1.0, %v1464_v29  ;;  %1393 = vmatpush1.bf16.msra.mxu0 %v1791_v56  ;;  %1422 = vmatpush3.bf16.msra.mxu1 %v1810_v20  ;;  %v1466_v56 = vpop.eup %1465 }
 0x174   :  { %v523_v1 = vrot.slane %v522_v50, 1  ;;  %1395 = vmatprep.subr.bf16.mxu0 %v1794_v57  ;;  %1423 = vmatprep.subr.bf16.mxu1 %v1611_v0  ;;  %v500_v57 = vadd.f32 1.0, %v1466_v56 }
 0x175   :  { %v496_v41 = vmul.f32 0.5, %v495_v11 }
 0x176   :  { %v524_v43 = vadd.f32 %v523_v1, %v522_v50 }
 0x177   :  { %v503_v17 = vmul.f32 %v502_v16, %v496_v41  ;;  %1397 = vmatpush1.bf16.msra.mxu0 %v1804_v7  ;;  %1425 = vmatpush3.bf16.msra.mxu1 %v1820_v39  ;;  %v501_v7 = vmul.f32 0.5, %v500_v57 }
 0x178   :  { %525 = vst [vmem:[#allocation10] sm:$0x1] %v524_v43  ;;  %1399 = vmatprep.subr.bf16.mxu0 %v1807_v9  ;;  %1426 = vmatprep.subr.bf16.mxu1 %v1611_v0 }
 0x179   :  { %v504_v20 = vadd.f32 %v503_v17, %v94_v3  ;;  %v506_v9 = vsub.f32 1.0, %v501_v7 }
 0x17b   :  { %1467 = vtanh.f32 %v504_v20  ;;  %1401 = vmatpush1.bf16.msra.mxu0 %v1814_v28  ;;  %1428 = vmatpush3.bf16.msra.mxu1 %v1830_v59  ;;  %v544_v20 = vld [vmem:[#allocation2 + $0x28] sm:$0xff] }
 0x17c   :  { %1403 = vmatprep.subr.bf16.mxu0 %v1817_v30  ;;  %1429 = vmatprep.subr.bf16.mxu1 %v1611_v0  ;;  %v508_v30 = vmul.f32 0.0, %v501_v7 }
 0x17f   :  { %1405 = vmatpush1.bf16.msra.mxu0 %v1824_v47  ;;  %1431 = vmatpush3.bf16.msra.mxu1 %v1840_v18  ;;  %v529_v47 = vpop.permute.xlu0 %528 }
 0x180   :  { %1407 = vmatprep.subr.bf16.mxu0 %v1827_v48  ;;  %1432 = vmatprep.subr.bf16.mxu1 %v1611_v0 }
 0x183   :  { %1409 = vmatpush1.bf16.msra.mxu0 %v1834_v4  ;;  %1434 = vmatpush3.bf16.msra.mxu1 %v1848_v31 }
 0x184   :  { %1411 = vmatprep.subr.bf16.mxu0 %v1837_v5  ;;  %1435 = vmatprep.subr.bf16.mxu1 %v1611_v0 }
 0x185   :  { %v1468_v28 = vpop.eup %1467 }
 0x186   :  { %v507_v39 = vmul.f32 %v1468_v28, %v506_v9 }
 0x187   :  { %1413 = vmatpush1.bf16.msra.mxu0 %v1844_v23  ;;  %1437 = vmatpush3.bf16.msra.mxu1 %v1854_v35 }
 0x188   :  { %v1940_v48 = vadd.f32 %v508_v30, %v507_v39 }
 0x18a   :  { %v531_v59 = vmul.f32 %v529_v47, %v1940_v48  ;;  %847 = vmatmul.mubr.f32.vlgmr.msra.gmra.mrb[6].mxu0 %v1940_v48  ;;  %1212 = vmatmul.mubr.f32.vlgmr.msra.gmra.mrb[6].mxu1 %v1940_v48 }
 0x18c   :  { %v532_v4 = vrot.slane %v531_v59, 4 }
 0x18e   :  { %v533_v5 = vadd.f32 %v532_v4, %v531_v59 }
 0x190   :  { %v534_v18 = vrot.slane %v533_v5, 2 }
 0x192   :  { %v535_v0 = vadd.f32 %v534_v18, %v533_v5  ;;  %v977_v18 = vpop.permute.xlu1 %976 }
 0x194   :  { %v536_v31 = vrot.slane %v535_v0, 1 }
 0x196   :  { %v537_v24 = vadd.f32 %v536_v31, %v535_v0 }
 0x198   :  { %538 = vst [vmem:[#allocation10 + $0x3] sm:$0x1] %v537_v24 }
 0x23d   :  { %v659_v23 = vpop.f32.mrb[4].mxu0  ;;  %v730_v27 = vpop.f32.mrb[4].mxu1 }
 0x23e   :  { %v923_v35 = vadd.f32 %v659_v23, %v539_v25  ;;  %v661_v36 = vpop.f32.mrb[5].mxu0  ;;  %v1178_v42 = vpop.f32.mrb[5].mxu1  ;;  %v933_v63 = vadd.f32 %v1896_v37, %v730_v27 }
 0x23f   :  { %v928_v46 = vadd.f32 %v661_v36, %v540_v33 }
 0x240   :  { %v924_v45 = vmul.f32 0.5, %v923_v35 }
 0x241   :  { %v929_v51 = vmul.f32 0.5, %v928_v46 }
 0x242   :  { %1469 = vtanh.f32 %v924_v45 }
 0x243   :  { %1471 = vtanh.f32 %v929_v51 }
 0x24c   :  { %v1470_v54 = vpop.eup %1469 }
 0x24d   :  { %v926_v55 = vadd.f32 1.0, %v1470_v54  ;;  %v1472_v13 = vpop.eup %1471 }
 0x24e   :  { %v931_v21 = vadd.f32 1.0, %v1472_v13 }
 0x24f   :  { %v927_v60 = vmul.f32 0.5, %v926_v55 }
 0x250   :  { %v932_v38 = vmul.f32 0.5, %v931_v21 }
 0x251   :  { %v934_v8 = vmul.f32 %v933_v63, %v927_v60 }
 0x252   :  { %v937_v62 = vsub.f32 1.0, %v932_v38  ;;  %v939_v37 = vmul.f32 %v932_v38, %v1899_v12 }
 0x253   :  { %v935_v14 = vadd.f32 %v934_v8, %v541_v2 }
 0x255   :  { %1473 = vtanh.f32 %v935_v14 }
 0x25d   :  { %v848_v44 = vpop.f32.mrb[6].mxu0  ;;  %v919_v49 = vpop.f32.mrb[6].mxu1 }
 0x25e   :  { %v941_v52 = vadd.f32 %v848_v44, %v542_v40  ;;  %v850_v58 = vpop.f32.mrb[7].mxu0  ;;  %v1213_v61 = vpop.f32.mrb[7].mxu1  ;;  %v951_v56 = vadd.f32 %v1915_v26, %v919_v49 }
 0x25f   :  { %v1474_v15 = vpop.eup %1473  ;;  %v946_v32 = vadd.f32 %v850_v58, %v543_v53 }
 0x260   :  { %v942_v19 = vmul.f32 0.5, %v941_v52  ;;  %v938_v22 = vmul.f32 %v1474_v15, %v937_v62 }
 0x261   :  { %v947_v29 = vmul.f32 0.5, %v946_v32 }
 0x262   :  { %1475 = vtanh.f32 %v942_v19  ;;  %v940_v6 = vadd.f32 %v939_v37, %v938_v22 }
 0x263   :  { %1477 = vtanh.f32 %v947_v29 }
 0x264   :  { %v966_v10 = vmul.f32 %v964_v34, %v940_v6 }
 0x266   :  { %v967_v50 = vrot.slane %v966_v10, 4 }
 0x268   :  { %v968_v11 = vadd.f32 %v967_v50, %v966_v10 }
 0x26a   :  { %v969_v16 = vrot.slane %v968_v11, 2 }
 0x26c   :  { %v1476_v1 = vpop.eup %1475  ;;  %v970_v41 = vadd.f32 %v969_v16, %v968_v11 }
 0x26d   :  { %v944_v43 = vadd.f32 1.0, %v1476_v1  ;;  %v1478_v7 = vpop.eup %1477 }
 0x26e   :  { %v971_v3 = vrot.slane %v970_v41, 1  ;;  %v949_v28 = vadd.f32 1.0, %v1478_v7 }
 0x26f   :  { %v945_v17 = vmul.f32 0.5, %v944_v43 }
 0x270   :  { %v972_v57 = vadd.f32 %v971_v3, %v970_v41  ;;  %v950_v30 = vmul.f32 0.5, %v949_v28 }
 0x271   :  { %v952_v12 = vmul.f32 %v951_v56, %v945_v17 }
 0x272   :  { %973 = vst [vmem:[#allocation10 + $0x1] sm:$0x1] %v972_v57  ;;  %v955_v39 = vsub.f32 1.0, %v950_v30  ;;  %v957_v4 = vmul.f32 %v950_v30, %v1940_v48 }
 0x273   :  { %v953_v9 = vadd.f32 %v952_v12, %v544_v20 }
 0x275   :  { %1479 = vtanh.f32 %v953_v9 }
 0x27f   :  { %v1480_v47 = vpop.eup %1479 }
 0x280   :  { %v956_v59 = vmul.f32 %v1480_v47, %v955_v39 }
 0x282   :  { %v958_v5 = vadd.f32 %v957_v4, %v956_v59 }
 0x284   :  { %v979_v0 = vmul.f32 %v977_v18, %v958_v5 }
 0x286   :  { %v980_v31 = vrot.slane %v979_v0, 4 }
 0x288   :  { %v981_v24 = vadd.f32 %v980_v31, %v979_v0 }
 0x28a   :  { %v982_v26 = vrot.slane %v981_v24, 2 }
 0x28c   :  { %v983_v25 = vadd.f32 %v982_v26, %v981_v24 }
 0x28e   :  { %v984_v23 = vrot.slane %v983_v25, 1 }
 0x290   :  { %v985_v27 = vadd.f32 %v984_v23, %v983_v25 }
 0x292   :  { %986 = vst [vmem:[#allocation10 + $0x2] sm:$0x1] %v985_v27 }
 0x293   :  { %1580 = shalt.err (!%p1577_p8)
}
 0x294   :  { %s1581_s19 = scalar_lea.hbm %s1965_s4, 64 }
 0x295   :  { %p1582_p9 = scmp.ne.s32.totalorder %s1965_s4, %s1581_s19  ;;  %p1585_p10 = scmp.lt.u32.totalorder %s1581_s19, %s1965_s4 }
 0x297   :  { %p1587_p11 = pnand %p1585_p10, %p1582_p9 }
 0x299   :  { %1590 = shalt.err (!%p1587_p11)
}
 0x29a   :  { %996 = dma.vmem_to_hbm [thread:$0]  %s994_s15, 64, %s1965_s4, [#allocation4]  }
 0x29b   :  { %1597 = dma.done.wait [#allocation4], 64  }
 0x29c   :  { %1598 = vsyncadd [#allocation4], 4294967232 }
 0x29d   :  { %1000 = vsyncpa [#allocation3], 1 }
 0x29e   :  { %1001 = vsyncpa [#allocation6], 1 }
 0x29f   :  { %1002 = vsyncpa [#allocation9], 1 }
 0x2a0   :  { %1003 = vsyncpa [#allocation4], 1 }

</bundles_post_ra>
